<compile_context>
chip_gen: v5e
topology: v5e:2x2
jax: 0.10.0
libtpu: 0.0.40
codegen_flags: <defaults>
</compile_context>

<pallas_src>
import jax
import jax.numpy as jnp
from jax.experimental import pallas as pl
from jax.experimental.pallas import tpu as pltpu


def _lambda_silu_kernel(x_ref, o_ref):
    # func(x) = x * sigmoid(x), computed in f32.
    # sigmoid(x) == 0.5 * tanh(0.5 * x) + 0.5  (exact, single EUP op).
    xf = x_ref[...].astype(jnp.float32)
    sig = 0.5 * jnp.tanh(0.5 * xf) + 0.5
    o_ref[...] = (xf * sig).astype(o_ref.dtype)


_LANE_CANDIDATES = (8192, 4096, 2048, 1024, 512, 256, 128)
_TARGET_BLOCK_ELEMS = 1 << 20       # ~4 MiB f32 / ~2 MiB bf16 per block
_MIN_SPLIT_ELEMS = 256 * 1024       # >= ~1 MiB f32: ensure >=2 blocks for v7x's 2 TCs


def _round_up(n: int, m: int) -> int:
    return ((n + m - 1) // m) * m


def _silu_pallas_2d(x2d: jax.Array) -> jax.Array:
    """Runs the SiLU kernel over a lane-dense (rows, lane) slab."""
    rows, lane = x2d.shape
    total = rows * lane
    itemsize = jnp.dtype(x2d.dtype).itemsize
    # Keep row tiles aligned to the native packed-sublane tile of the dtype.
    granule = max(8, 32 // max(1, itemsize))   # 8 f32 / 16 bf16 / 32 int8-fp8

    target_rows = max(granule, _TARGET_BLOCK_ELEMS // lane)
    if rows <= target_rows:
        tile_rows = rows                       # single block along rows ...
        if total >= _MIN_SPLIT_ELEMS:          # ... unless big enough to feed 2 TCs
            half = _round_up(pl.cdiv(rows, 2), granule)
            if half < rows:
                tile_rows = half
    else:
        tile_rows = max(granule, (target_rows // granule) * granule)
        # Rebalance so the ragged last block is not tiny (same #blocks, even split).
        nblocks = pl.cdiv(rows, tile_rows)
        tile_rows = min(rows, _round_up(pl.cdiv(rows, nblocks), granule))

    grid = (pl.cdiv(rows, tile_rows),)
    return pl.pallas_call(
        _lambda_silu_kernel,
        out_shape=jax.ShapeDtypeStruct((rows, lane), x2d.dtype),
        grid=grid,
        in_specs=[pl.BlockSpec((tile_rows, lane), lambda i: (i, 0))],
        out_specs=pl.BlockSpec((tile_rows, lane), lambda i: (i, 0)),
        compiler_params=pltpu.CompilerParams(
            dimension_semantics=("parallel",),
            vmem_limit_bytes=40 << 20,
        ),
    )(x2d)


def _silu_jnp(x: jax.Array) -> jax.Array:
    """Plain-jnp fallback for the tiny unaligned tail (< lane elements)."""
    xf = x.astype(jnp.float32)
    return (xf * (0.5 * jnp.tanh(0.5 * xf) + 0.5)).astype(x.dtype)


@jax.jit
def lambda_forward(x: jax.Array) -> jax.Array:
    """Applies func(x) = x * sigmoid(x) elementwise via a Pallas TPU kernel."""
    orig_shape = x.shape
    total = x.size
    if total == 0:
        return x

    # Widest lane-dense last dim (multiple of 128) that divides the element
    # count; if none does, use 128 and handle the <=127-element tail in jnp.
    lane = None
    for cand in _LANE_CANDIDATES:
        if total >= cand and total % cand == 0:
            lane = cand
            break
    if lane is None:
        lane = 128

    x_flat = jnp.reshape(x, (total,))
    main = (total // lane) * lane

    if main == 0:
        # Tiny tensor (< 128 elements): not worth a kernel launch.
        return jnp.reshape(_silu_jnp(x_flat), orig_shape)

    if main == total:
        # Common case: fully aligned, zero-copy 2D view, no pad / no slice.
        y2d = _silu_pallas_2d(jnp.reshape(x_flat, (total // lane, lane)))
        return jnp.reshape(y2d, orig_shape)

    # Non-divisible size: kernel on the aligned prefix, tiny tail in jnp.
    y_main = _silu_pallas_2d(jnp.reshape(x_flat[:main], (main // lane, lane)))
    y_tail = _silu_jnp(x_flat[main:])
    y_flat = jnp.concatenate([jnp.reshape(y_main, (main,)), y_tail])
    return jnp.reshape(y_flat, orig_shape)


if __name__ == "__main__":
    key = jax.random.PRNGKey(0)

    # Primary NCHW test, small shapes: batch=2, channels=4, spatial=16x16.
    x = jax.random.normal(key, (2, 4, 16, 16), dtype=jnp.float32)
    y = lambda_forward(x)
    jax.block_until_ready(y)
    y_ref = x * jax.nn.sigmoid(x)
    assert y.shape == x.shape and y.dtype == x.dtype
    assert jnp.allclose(y, y_ref, atol=1e-5, rtol=1e-5)

    # Odd-sized input (3*5*7*11 = 1155 elems): aligned-prefix + jnp-tail path.
    key2 = jax.random.PRNGKey(1)
    x2 = jax.random.normal(key2, (3, 5, 7, 11), dtype=jnp.float32)
    y2 = lambda_forward(x2)
    jax.block_until_ready(y2)
    y2_ref = x2 * jax.nn.sigmoid(x2)
    assert y2.shape == x2.shape and y2.dtype == x2.dtype
    assert jnp.allclose(y2, y2_ref, atol=1e-5, rtol=1e-5)

    print("KERNEL_OK")
</pallas_src>

<mosaic_0001>
module attributes {stable_mosaic.version = 11 : i64} {
  func.func @_lambda_silu_kernel(%arg0: i32, %arg1: memref<1x2048xf32, #tpu.memory_space<vmem>>, %arg2: memref<1x2048xf32, #tpu.memory_space<vmem>>) attributes {dimension_semantics = [#tpu.dimension_semantics<parallel>], iteration_bounds = array<i64: 1>, scalar_prefetch = 0 : i64, scratch_operands = 0 : i64, tpu.core_type = #tpu.core_type<tc>, window_params = [{transform_indices = @transform_0, window_bounds = array<i64: 1, 2048>}, {transform_indices = @transform_1, window_bounds = array<i64: 1, 2048>}]} {
    %c0 = arith.constant 0 : index
    %c0_0 = arith.constant 0 : index
    %0 = vector.load %arg1[%c0, %c0_0] : memref<1x2048xf32, #tpu.memory_space<vmem>>, vector<1x2048xf32>
    %cst = arith.constant 5.000000e-01 : f32
    %1 = vector.broadcast %cst : f32 to vector<1x2048xf32>
    %2 = arith.mulf %1, %0 : vector<1x2048xf32>
    %3 = math.tanh %2 : vector<1x2048xf32>
    %cst_1 = arith.constant 5.000000e-01 : f32
    %4 = vector.broadcast %cst_1 : f32 to vector<1x2048xf32>
    %5 = arith.mulf %4, %3 : vector<1x2048xf32>
    %cst_2 = arith.constant 5.000000e-01 : f32
    %6 = vector.broadcast %cst_2 : f32 to vector<1x2048xf32>
    %7 = arith.addf %5, %6 : vector<1x2048xf32>
    %8 = arith.mulf %0, %7 : vector<1x2048xf32>
    %c0_3 = arith.constant 0 : index
    %c0_4 = arith.constant 0 : index
    %9 = vector.load %arg2[%c0_3, %c0_4] : memref<1x2048xf32, #tpu.memory_space<vmem>>, vector<1x2048xf32>
    tpu.vector_store %arg2[%c0_3, %c0_4], %8 {strides = array<i32>} : memref<1x2048xf32, #tpu.memory_space<vmem>>, vector<1x2048xf32>,
    return
  }
  func.func @transform_0(%arg0: i32) -> (i32, i32) {
    %c0_i32 = arith.constant 0 : i32
    %c0_i32_0 = arith.constant 0 : i32
    return %arg0, %c0_i32 : i32, i32
  }
  func.func @transform_1(%arg0: i32) -> (i32, i32) {
    %c0_i32 = arith.constant 0 : i32
    %c0_i32_0 = arith.constant 0 : i32
    return %arg0, %c0_i32 : i32, i32
  }
}

</mosaic_0001>

<bundles_post_ra>
// kernel: lambda_forward.1
= control target key start
LH: loop header
LB: loop body
LE: loop exit
PB: predicated region body
PF: predicated region fallthrough
CT: control target
= control target key end

     0   :  { %s52_s0 = inlined_call_operand.vmem [shape: f32[1,2048], index: 0, kind: input, shape index: {}]   ;;  %s53_s1 = inlined_call_operand.vmem [shape: f32[1,2048], index: 1, kind: output, shape index: {}]  }
   0x1   :  { %v8_v0 = vld [vmem:[%s52_s0] sm:$0xff]  ;;  %v9_v1 = vld [vmem:[%s52_s0 + $0x8] sm:$0xff] }
   0x2   :  { %v10_v2 = vmul.f32 0.5, %v8_v0  ;;  %v11_v3 = vmul.f32 0.5, %v9_v1 }
   0x4   :  { %26 = vtanh.f32 %v10_v2 }
   0x5   :  { %28 = vtanh.f32 %v11_v3 }
   0xa   :  { %v27_v4 = vpop.eup %26 }
   0xb   :  { %v29_v5 = vpop.eup %28  ;;  %v14_v6 = vmul.f32 0.5, %v27_v4 }
   0xc   :  { %v15_v7 = vmul.f32 0.5, %v29_v5 }
   0xd   :  { %v16_v8 = vadd.f32 0.5, %v14_v6 }
   0xe   :  { %v17_v9 = vadd.f32 0.5, %v15_v7 }
   0xf   :  { %v18_v10 = vmul.f32 %v16_v8, %v8_v0 }
  0x10   :  { %v19_v11 = vmul.f32 %v17_v9, %v9_v1 }
  0x11   :  { %20 = vst [vmem:[%s53_s1] sm:$0xff] %v18_v10 }
  0x12   :  { %21 = vst [vmem:[%s53_s1 + $0x8] sm:$0xff] %v19_v11 }

</bundles_post_ra>
